<compile_context>
chip_gen: v5e
topology: v5e:2x2
jax: 0.10.0
libtpu: 0.0.40
codegen_flags: <defaults>
</compile_context>

<pallas_src>
import jax
import jax.numpy as jnp
from jax.experimental import pallas as pl
from jax.experimental.pallas import tpu as pltpu

# ---------------- shapes (small, deterministic) ----------------
B, C, H, W = 2, 4, 16, 16      # batch, channels, spatial
HID = 32                       # embedding / hidden size
NC = 10                        # number of classes (softmax over dim=1)
NUM_MODELS = 4
HW = H * W                     # 256
FUSED_HID = NUM_MODELS * HID   # 128 -> exactly one vreg lane width
FUSED_NC = NUM_MODELS * NC     # 40


def combined_kernel(x_ref, w1_ref, w2_ref, out_ref):
    # x_ref:   [B, C, H*W]        lane-dense input (pooling = cross-lane reduce)
    # w1_ref:  [C+1, 4*HID]       rows 0..C-1: fused embedding weights with the
    #                             1/HW mean-pool scale pre-folded; row C: bias
    # w2_ref:  [4*HID+1, 4*NC]    rows 0..127: block-diagonal classifier,
    #                             row 128: fused classifier bias
    # out_ref: [NUM_MODELS, B, NC]  per-model softmax(pred)

    # global average pool over spatial (1/HW folded into w1) -> [B, C]
    pooled = jnp.sum(x_ref[...], axis=-1)

    # fused embedding for all 4 models: one lane-dense [C, 128] MXU push
    emb = jnp.dot(pooled, w1_ref[:C, :], preferred_element_type=jnp.float32)
    emb = emb + w1_ref[C:C + 1, :]
    hid = jnp.maximum(emb, 0.0)

    # fused block-diagonal classifier: one [128, 40] MXU push
    logits = jnp.dot(hid, w2_ref[:FUSED_HID, :],
                     preferred_element_type=jnp.float32)
    logits = logits + w2_ref[FUSED_HID:FUSED_HID + 1, :]

    # per-model softmax.  Any per-row constant shift cancels inside each
    # segment, so a single row-max + single exp covers all 4 heads.
    m = jnp.max(logits, axis=1, keepdims=True)        # [B, 1]
    e = jnp.exp(logits - m)                           # [B, 40]
    for i in range(NUM_MODELS):                       # static unroll (4)
        seg = e[:, i * NC:(i + 1) * NC]               # [B, NC]
        denom = jnp.sum(seg, axis=1, keepdims=True)
        out_ref[i] = (seg / denom).astype(out_ref.dtype)


def pack_params(wemb, bemb, wcls, bcls):
    """One-time parameter packing (model construction, not the forward pass)."""
    dt = jnp.float32
    # fused embedding weights [C, 4*HID], mean-pool 1/HW folded in, + bias row
    w1 = jnp.concatenate([wemb[i] for i in range(NUM_MODELS)], axis=1) * (1.0 / HW)
    b1 = jnp.concatenate([bemb[i].reshape(1, HID) for i in range(NUM_MODELS)],
                         axis=1)
    w1_aug = jnp.concatenate([w1, b1], axis=0).astype(dt)        # [C+1, 128]

    # block-diagonal classifier [4*HID, 4*NC] + fused bias row -> [129, 40]
    w2 = jax.scipy.linalg.block_diag(*[wcls[i] for i in range(NUM_MODELS)])
    b2 = jnp.concatenate([bcls[i].reshape(1, NC) for i in range(NUM_MODELS)],
                         axis=1)
    w2_aug = jnp.concatenate([w2, b2], axis=0).astype(dt)        # [129, 40]
    return w1_aug, w2_aug


def combined_model_v2(x, w1_aug, w2_aug):
    """x: [B, C, H, W] float32; packed params from pack_params().
    Returns tuple of 4 arrays, each [B, NC] (softmax'd predictions)."""
    x3 = x.reshape(B, C, HW).astype(jnp.float32)                 # [2, 4, 256]

    out = pl.pallas_call(
        combined_kernel,
        out_shape=jax.ShapeDtypeStruct((NUM_MODELS, B, NC), jnp.float32),
        in_specs=[
            pl.BlockSpec(memory_space=pltpu.MemorySpace.VMEM),   # x3
            pl.BlockSpec(memory_space=pltpu.MemorySpace.VMEM),   # w1_aug
            pl.BlockSpec(memory_space=pltpu.MemorySpace.VMEM),   # w2_aug
        ],
        out_specs=pl.BlockSpec(memory_space=pltpu.MemorySpace.VMEM),
    )(x3, w1_aug, w2_aug)

    return tuple(out[i] for i in range(NUM_MODELS))


def reference(x, wemb, bemb, wcls, bcls):
    # plain-JAX reference for sanity checking
    pooled = jnp.mean(x.astype(jnp.float32), axis=(2, 3))        # [B, C]
    outs = []
    for i in range(NUM_MODELS):
        emb = pooled @ wemb[i] + bemb[i]                         # [B, HID]
        logits = jnp.maximum(emb, 0.0) @ wcls[i] + bcls[i]       # [B, NC]
        outs.append(jax.nn.softmax(logits, axis=1))
    return tuple(outs)


if __name__ == "__main__":
    key = jax.random.PRNGKey(0)
    kx, k1, k2, k3, k4 = jax.random.split(key, 5)

    x = jax.random.normal(kx, (B, C, H, W), dtype=jnp.float32)

    # deterministic parameter init (synthetic, no checkpoint load)
    # TODO(synk): the four sub-models are unspecified in the PyTorch source;
    #             they are synthesized here as GAP -> Linear -> ReLU -> Linear.
    wemb = 0.1 * jax.random.normal(k1, (NUM_MODELS, C, HID), dtype=jnp.float32)
    bemb = 0.1 * jax.random.normal(k2, (NUM_MODELS, 1, HID), dtype=jnp.float32)
    wcls = 0.1 * jax.random.normal(k3, (NUM_MODELS, HID, NC), dtype=jnp.float32)
    bcls = 0.1 * jax.random.normal(k4, (NUM_MODELS, 1, NC), dtype=jnp.float32)

    # one-time packing (model construction)
    w1_aug, w2_aug = pack_params(wemb, bemb, wcls, bcls)
    w1_aug, w2_aug = jax.block_until_ready((w1_aug, w2_aug))

    fwd = jax.jit(combined_model_v2)
    preds = fwd(x, w1_aug, w2_aug)
    preds = jax.block_until_ready(preds)

    refs = reference(x, wemb, bemb, wcls, bcls)
    for p, r in zip(preds, refs):
        assert p.shape == (B, NC)
        assert jnp.allclose(p, r, atol=1e-5, rtol=1e-5)
        # each row of a softmax output sums to 1
        assert jnp.allclose(jnp.sum(p, axis=1), 1.0, atol=1e-5)

    print("KERNEL_OK")
</pallas_src>

<mosaic_0001>
module attributes {stable_mosaic.version = 11 : i64} {
  func.func @combined_kernel(%arg0: memref<2x4x256xf32, #tpu.memory_space<vmem>>, %arg1: memref<5x128xf32, #tpu.memory_space<vmem>>, %arg2: memref<129x40xf32, #tpu.memory_space<vmem>>, %arg3: memref<4x2x10xf32, #tpu.memory_space<vmem>>) attributes {dimension_semantics = [], scalar_prefetch = 0 : i64, scratch_operands = 0 : i64, tpu.core_type = #tpu.core_type<tc>} {
    %c0 = arith.constant 0 : index
    %c0_0 = arith.constant 0 : index
    %c0_1 = arith.constant 0 : index
    %0 = vector.load %arg0[%c0, %c0_0, %c0_1] : memref<2x4x256xf32, #tpu.memory_space<vmem>>, vector<2x4x256xf32>
    %cst = arith.constant dense<0.000000e+00> : vector<2x4xf32>
    %1 = vector.multi_reduction <add>, %0, %cst [2] : vector<2x4x256xf32> to vector<2x4xf32>
    %c0_2 = arith.constant 0 : index
    %c0_3 = arith.constant 0 : index
    %2 = vector.load %arg1[%c0_2, %c0_3] : memref<5x128xf32, #tpu.memory_space<vmem>>, vector<4x128xf32>
    %cst_4 = arith.constant dense<0.000000e+00> : vector<2x128xf32>
    %3 = tpu.matmul %1, %2, %cst_4 {dimension_numbers = #tpu.dot_dimension_numbers<[1], [0], [0], [1], [0, 0, 1, 1], [], []>} : vector<2x4xf32>, vector<4x128xf32>, vector<2x128xf32> -> vector<2x128xf32>
    %c4 = arith.constant 4 : index
    %c0_5 = arith.constant 0 : index
    %4 = vector.load %arg1[%c4, %c0_5] : memref<5x128xf32, #tpu.memory_space<vmem>>, vector<1x128xf32>
    %5 = vector.broadcast %4 : vector<1x128xf32> to vector<2x128xf32>
    %6 = arith.addf %3, %5 : vector<2x128xf32>
    %cst_6 = arith.constant 0.000000e+00 : f32
    %7 = vector.broadcast %cst_6 : f32 to vector<2x128xf32>
    %8 = arith.maximumf %6, %7 : vector<2x128xf32>
    %c0_7 = arith.constant 0 : index
    %c0_8 = arith.constant 0 : index
    %9 = vector.load %arg2[%c0_7, %c0_8] : memref<129x40xf32, #tpu.memory_space<vmem>>, vector<128x40xf32>
    %cst_9 = arith.constant dense<0.000000e+00> : vector<2x40xf32>
    %10 = tpu.matmul %8, %9, %cst_9 {dimension_numbers = #tpu.dot_dimension_numbers<[1], [0], [0], [1], [0, 0, 1, 1], [], []>} : vector<2x128xf32>, vector<128x40xf32>, vector<2x40xf32> -> vector<2x40xf32>
    %c128 = arith.constant 128 : index
    %c0_10 = arith.constant 0 : index
    %11 = vector.load %arg2[%c128, %c0_10] : memref<129x40xf32, #tpu.memory_space<vmem>>, vector<1x40xf32>
    %12 = vector.broadcast %11 : vector<1x40xf32> to vector<2x40xf32>
    %13 = arith.addf %10, %12 : vector<2x40xf32>
    %cst_11 = arith.constant dense<0xFF800000> : vector<2xf32>
    %14 = vector.multi_reduction <maximumf>, %13, %cst_11 [1] : vector<2x40xf32> to vector<2xf32>
    %15 = vector.shape_cast %14 : vector<2xf32> to vector<2x1xf32>
    %16 = vector.broadcast %15 : vector<2x1xf32> to vector<2x40xf32>
    %17 = arith.subf %13, %16 : vector<2x40xf32>
    %18 = math.exp %17 : vector<2x40xf32>
    %19 = vector.extract_strided_slice %18 {offsets = [0, 0], sizes = [2, 10], strides = [1, 1]} : vector<2x40xf32> to vector<2x10xf32>
    %cst_12 = arith.constant dense<0.000000e+00> : vector<2xf32>
    %20 = vector.multi_reduction <add>, %19, %cst_12 [1] : vector<2x10xf32> to vector<2xf32>
    %21 = vector.shape_cast %20 : vector<2xf32> to vector<2x1xf32>
    %22 = vector.broadcast %21 : vector<2x1xf32> to vector<2x10xf32>
    %23 = arith.divf %19, %22 : vector<2x10xf32>
    %c0_13 = arith.constant 0 : index
    %c0_14 = arith.constant 0 : index
    %c0_15 = arith.constant 0 : index
    %24 = vector.load %arg3[%c0_13, %c0_14, %c0_15] : memref<4x2x10xf32, #tpu.memory_space<vmem>>, vector<1x2x10xf32>
    %25 = vector.shape_cast %24 : vector<1x2x10xf32> to vector<2x10xf32>
    %26 = vector.shape_cast %23 : vector<2x10xf32> to vector<1x2x10xf32>
    tpu.vector_store %arg3[%c0_13, %c0_14, %c0_15], %26 {strides = array<i32>} : memref<4x2x10xf32, #tpu.memory_space<vmem>>, vector<1x2x10xf32>,
    %27 = vector.extract_strided_slice %18 {offsets = [0, 10], sizes = [2, 10], strides = [1, 1]} : vector<2x40xf32> to vector<2x10xf32>
    %cst_16 = arith.constant dense<0.000000e+00> : vector<2xf32>
    %28 = vector.multi_reduction <add>, %27, %cst_16 [1] : vector<2x10xf32> to vector<2xf32>
    %29 = vector.shape_cast %28 : vector<2xf32> to vector<2x1xf32>
    %30 = vector.broadcast %29 : vector<2x1xf32> to vector<2x10xf32>
    %31 = arith.divf %27, %30 : vector<2x10xf32>
    %c1 = arith.constant 1 : index
    %c0_17 = arith.constant 0 : index
    %c0_18 = arith.constant 0 : index
    %32 = vector.load %arg3[%c1, %c0_17, %c0_18] : memref<4x2x10xf32, #tpu.memory_space<vmem>>, vector<1x2x10xf32>
    %33 = vector.shape_cast %32 : vector<1x2x10xf32> to vector<2x10xf32>
    %34 = vector.shape_cast %31 : vector<2x10xf32> to vector<1x2x10xf32>
    tpu.vector_store %arg3[%c1, %c0_17, %c0_18], %34 {strides = array<i32>} : memref<4x2x10xf32, #tpu.memory_space<vmem>>, vector<1x2x10xf32>,
    %35 = vector.extract_strided_slice %18 {offsets = [0, 20], sizes = [2, 10], strides = [1, 1]} : vector<2x40xf32> to vector<2x10xf32>
    %cst_19 = arith.constant dense<0.000000e+00> : vector<2xf32>
    %36 = vector.multi_reduction <add>, %35, %cst_19 [1] : vector<2x10xf32> to vector<2xf32>
    %37 = vector.shape_cast %36 : vector<2xf32> to vector<2x1xf32>
    %38 = vector.broadcast %37 : vector<2x1xf32> to vector<2x10xf32>
    %39 = arith.divf %35, %38 : vector<2x10xf32>
    %c2 = arith.constant 2 : index
    %c0_20 = arith.constant 0 : index
    %c0_21 = arith.constant 0 : index
    %40 = vector.load %arg3[%c2, %c0_20, %c0_21] : memref<4x2x10xf32, #tpu.memory_space<vmem>>, vector<1x2x10xf32>
    %41 = vector.shape_cast %40 : vector<1x2x10xf32> to vector<2x10xf32>
    %42 = vector.shape_cast %39 : vector<2x10xf32> to vector<1x2x10xf32>
    tpu.vector_store %arg3[%c2, %c0_20, %c0_21], %42 {strides = array<i32>} : memref<4x2x10xf32, #tpu.memory_space<vmem>>, vector<1x2x10xf32>,
    %43 = vector.extract_strided_slice %18 {offsets = [0, 30], sizes = [2, 10], strides = [1, 1]} : vector<2x40xf32> to vector<2x10xf32>
    %cst_22 = arith.constant dense<0.000000e+00> : vector<2xf32>
    %44 = vector.multi_reduction <add>, %43, %cst_22 [1] : vector<2x10xf32> to vector<2xf32>
    %45 = vector.shape_cast %44 : vector<2xf32> to vector<2x1xf32>
    %46 = vector.broadcast %45 : vector<2x1xf32> to vector<2x10xf32>
    %47 = arith.divf %43, %46 : vector<2x10xf32>
    %c3 = arith.constant 3 : index
    %c0_23 = arith.constant 0 : index
    %c0_24 = arith.constant 0 : index
    %48 = vector.load %arg3[%c3, %c0_23, %c0_24] : memref<4x2x10xf32, #tpu.memory_space<vmem>>, vector<1x2x10xf32>
    %49 = vector.shape_cast %48 : vector<1x2x10xf32> to vector<2x10xf32>
    %50 = vector.shape_cast %47 : vector<2x10xf32> to vector<1x2x10xf32>
    tpu.vector_store %arg3[%c3, %c0_23, %c0_24], %50 {strides = array<i32>} : memref<4x2x10xf32, #tpu.memory_space<vmem>>, vector<1x2x10xf32>,
    return
  }
}

</mosaic_0001>

<bundles_post_ra>
// kernel: combined_model_v2.1
= control target key start
LH: loop header
LB: loop body
LE: loop exit
PB: predicated region body
PF: predicated region fallthrough
CT: control target
= control target key end

     0   :  { %vm29_vm0 = vcmask 1043456   ;;  %v45_v26 = vlaneseq  ;;  %vm49_vm1 = vcmask 1041409   ;;  %vm51_vm2 = vcmask 31744   ;;  %s250_s25 = smov 118   ;;  %s376_s0 = inlined_call_operand.vmem [shape: f32[2,4,256], index: 0, kind: input, shape index: {}]   ;;  %s377_s1 = inlined_call_operand.vmem [shape: f32[5,128], index: 1, kind: input, shape index: {}]   ;;  %s378_s2 = inlined_call_operand.vmem [shape: f32[129,40], index: 2, kind: input, shape index: {}]   ;;  %s379_s3 = inlined_call_operand.vmem [shape: f32[4,2,10], index: 3, kind: output, shape index: {}]  }
   0x1   :  { %v14_v0 = vld [vmem:[%s376_s0] sm:$0xff]  ;;  %v15_v1 = vld [vmem:[%s376_s0 + $0x8] sm:$0xff]  ;;  %v93_v13 = vld [vmem:[%s378_s2 + $0x78] sm:$0xff]  ;;  %vm116_vm3 = vcmask 320512   ;;  %vm123_vm4 = vcmask 74752  }
   0x2   :  { %18 = vst [vmem:[#allocation1] ss:$2 sm:$0xff] %v14_v0  ;;  %v40_v12 = vld [vmem:[%s377_s1] sm:$0xf]  ;;  %v92_v14 = vld [vmem:[%s378_s2 + $0x70] sm:$0xff]  ;;  %96 = vmatpush.msra.mxu1 %v93_v13  ;;  %v91_v15 = vld [vmem:[%s378_s2 + $0x68] sm:$0xff] }
   0x3   :  { %22 = vst [vmem:[#allocation1 + $0x10] ss:$2 sm:$0xff] %v15_v1  ;;  %229 = vmatpush.msk.msra.mxu0 %vm29_vm0, %v40_v12  ;;  %v90_v16 = vld [vmem:[%s378_s2 + $0x60] sm:$0xff]  ;;  %v89_v17 = vld [vmem:[%s378_s2 + $0x58] sm:$0xff]  ;;  %v88_v18 = vld [vmem:[%s378_s2 + $0x50] sm:$0xff]  ;;  %v46_v28 = vand.u32 127, %v45_v26 }
   0x4   :  { %97 = vmatpush.msra.mxu1 %v92_v14  ;;  %v87_v19 = vld [vmem:[%s378_s2 + $0x48] sm:$0xff]  ;;  %v86_v20 = vld [vmem:[%s378_s2 + $0x40] sm:$0xff]  ;;  %v85_v21 = vld [vmem:[%s378_s2 + $0x38] sm:$0xff] }
   0x5   :  { %v84_v22 = vld [vmem:[%s378_s2 + $0x30] sm:$0xff]  ;;  %v83_v23 = vld [vmem:[%s378_s2 + $0x28] sm:$0xff]  ;;  %v82_v25 = vld [vmem:[%s378_s2 + $0x20] sm:$0xff] }
   0x6   :  { %98 = vmatpush.msra.mxu1 %v91_v15  ;;  %v81_v27 = vld [vmem:[%s378_s2 + $0x18] sm:$0xff]  ;;  %v80_v33 = vld [vmem:[%s378_s2 + $0x10] sm:$0xff]  ;;  %v79_v34 = vld [vmem:[%s378_s2 + $0x8] sm:$0xff] }
   0x7   :  { %v78_v35 = vld [vmem:[%s378_s2] sm:$0xff] }
   0x8   :  { %99 = vmatpush.msra.mxu1 %v90_v16  ;;  %v237_v36 = vld [vmem:[%s377_s1 + $0x4] ss:$0 sm:$0xff]  ;;  %v238_v40 = vld [vmem:[%s378_s2 + $0x80] ss:$0 sm:$0xff]  ;;  %s249_s1 = smov 108   ;;  %s251_s2 = smov 98  }
   0x9   :  { %v19_v2 = vld.sshfl [vmem:[#allocation1] sm:$0xff pattern:$0x75316420]  ;;  %v20_v3 = vld.sshfl [vmem:[#allocation1 + $0x8] sm:$0xff pattern:$0x75316420] }
   0xa   :  { %v30_v4 = vsel %vm29_vm0, %v19_v2, 0.0  ;;  %v31_v5 = vsel %vm29_vm0, %v20_v3, 0.0  ;;  %v23_v6 = vld.sshfl [vmem:[#allocation1 + $0x10] sm:$0xff pattern:$0x75316420]  ;;  %100 = vmatpush.msra.mxu1 %v89_v17 }
   0xb   :  { %v32_v7 = vadd.f32 %v31_v5, %v30_v4  ;;  %v24_v8 = vld.sshfl [vmem:[#allocation1 + $0x18] sm:$0xff pattern:$0x75316420]  ;;  %v35_v9 = vsel %vm29_vm0, %v23_v6, 0.0 }
   0xc   :  { %v36_v10 = vsel %vm29_vm0, %v24_v8, 0.0  ;;  %101 = vmatpush.msra.mxu1 %v88_v18 }
   0xd   :  { %33 = vadd.xlane.f32.xlu0 %v32_v7  ;;  %v37_v11 = vadd.f32 %v36_v10, %v35_v9 }
   0xe   :  { %102 = vmatpush.msra.mxu1 %v87_v19 }
  0x10   :  { %103 = vmatpush.msra.mxu1 %v86_v20 }
  0x12   :  { %104 = vmatpush.msra.mxu1 %v85_v21 }
  0x14   :  { %105 = vmatpush.msra.mxu1 %v84_v22 }
  0x15   :  { %38 = vadd.xlane.f32.xlu0 %v37_v11 }
  0x16   :  { %106 = vmatpush.msra.mxu1 %v83_v23 }
  0x18   :  { %107 = vmatpush.msra.mxu1 %v82_v25 }
  0x1a   :  { %108 = vmatpush.msra.mxu1 %v81_v27 }
  0x1c   :  { %109 = vmatpush.msra.mxu1 %v80_v33 }
  0x1e   :  { %110 = vmatpush.msra.mxu1 %v79_v34 }
  0x20   :  { %111 = vmatpush.msra.mxu1 %v78_v35 }
  0x80   :  { %v34_v24 = vpop.xlane.xlu0 %33 }
  0x81   :  { %v47_v30 = vperm.slane %v34_v24, %v46_v28 }
  0x88   :  { %v39_v29 = vpop.xlane.xlu0 %38 }
  0x89   :  { %v48_v31 = vperm.slane %v39_v29, %v46_v28 }
  0x8b   :  { %v50_v32 = vsel %vm49_vm1, %v48_v31, %v47_v30 }
  0x8c   :  { %230 = vmatmul.msk.f32.vlgmr.msra.gmra.mxu0 %vm51_vm2, %v50_v32 }
 0x109   :  { %v74_v37 = vpop.f32.mrf.mxu0 }
 0x10a   :  { %v75_v38 = vadd.f32 %v237_v36, %v74_v37 }
 0x10c   :  { %v77_v39 = vmax.f32 %v75_v38, 0.0 }
 0x10e   :  { %112 = vmatmul.f32.vlgmr.msra.gmra.mxu1 %v77_v39 }
 0x18b   :  { %v113_v41 = vpop.f32.mrf.mxu1 }
 0x18c   :  { %v114_v42 = vadd.f32 %v238_v40, %v113_v41 }
 0x18e   :  { %v117_v43 = vsel %vm116_vm3, %v114_v42, -inf }
 0x18f   :  { %118 = vmax.xlane.f32.xlu1 %v117_v43 }
 0x202   :  { %v119_v44 = vpop.xlane.xlu1 %118 }
 0x203   :  { %v120_v45 = vsub.f32 %v114_v42, %v119_v44 }
 0x205   :  { %v121_v46 = vmul.f32 1.442695, %v120_v45 }
 0x207   :  { %239 = vpow2.f32 %v121_v46 }
 0x20d   :  { %v340_v47 = vpop.eup %239 }
 0x20e   :  { %171 = vrot.lane.b32.xlu2 %v340_v47, %s249_s1  ;;  %144 = vrot.lane.b32.xlu1 %v340_v47, %s250_s25  ;;  %v124_v54 = vsel %vm123_vm4, %v340_v47, 0.0 }
 0x216   :  { %198 = vrot.lane.b32.xlu2 %v340_v47, %s251_s2 }
 0x268   :  { %v172_v48 = vpop.permute.xlu2 %171 }
 0x269   :  { %v174_v49 = vsel %vm123_vm4, %v172_v48, 0.0 }
 0x26a   :  { %175 = vadd.xlane.f32.xlu2 %v174_v49 }
 0x270   :  { %v199_v52 = vpop.permute.xlu2 %198 }
 0x271   :  { %v201_v53 = vsel %vm123_vm4, %v199_v52, 0.0 }
 0x280   :  { %v145_v50 = vpop.permute.xlu1 %144 }
 0x281   :  { %v147_v51 = vsel %vm123_vm4, %v145_v50, 0.0 }
 0x282   :  { %148 = vadd.xlane.f32.xlu0 %v147_v51 }
 0x28a   :  { %202 = vadd.xlane.f32.xlu0 %v201_v53 }
 0x292   :  { %125 = vadd.xlane.f32.xlu0 %v124_v54 }
 0x2dd   :  { %v176_v55 = vpop.xlane.xlu2 %175 }
 0x2de   :  { %241 = vrcp.f32 %v176_v55  ;;  %v188_v59 = vand.u32 2147483648, %v176_v55  ;;  %v186_v61 = vand.u32 2147483647, %v176_v55  ;;  %vm182_vm6 = vweird.f32 %v176_v55 }
 0x2e0   :  { %v189_v63 = vor.u32 1.1754944e-38, %v188_v59  ;;  %vm187_vm8 = vcmp.eq.f32.partialorder %v186_v61, 8.507059e+37 }
 0x2e4   :  { %v242_v56 = vpop.eup %241 }
 0x2e5   :  { %v178_v57 = vmul.f32 %v242_v56, %v176_v55  ;;  %vm183_vm5 = vweird.f32 %v242_v56 }
 0x2e6   :  { %vm184_vm7 = vmor %vm182_vm6, %vm183_vm5 }
 0x2e7   :  { %v179_v58 = vsub.f32 1.0, %v178_v57 }
 0x2e9   :  { %v180_v60 = vmul.f32 %v242_v56, %v179_v58 }
 0x2eb   :  { %v181_v62 = vadd.f32 %v242_v56, %v180_v60 }
 0x2ed   :  { %v185_v0 = vsel %vm184_vm7, %v242_v56, %v181_v62 }
 0x2ee   :  { %v190_v1 = vsel %vm187_vm8, %v189_v63, %v185_v0 }
 0x2ef   :  { %v191_v2 = vmul.f32 %v340_v47, %v190_v1 }
 0x2f1   :  { %193 = vrot.lane.b32.xlu0 %v191_v2, %s249_s1 }
 0x2f5   :  { %v149_v3 = vpop.xlane.xlu0 %148 }
 0x2f6   :  { %243 = vrcp.f32 %v149_v3  ;;  %v161_v9 = vand.u32 2147483648, %v149_v3  ;;  %v159_v10 = vand.u32 2147483647, %v149_v3  ;;  %vm155_vm10 = vweird.f32 %v149_v3 }
 0x2f8   :  { %v162_v13 = vor.u32 1.1754944e-38, %v161_v9  ;;  %vm160_vm12 = vcmp.eq.f32.partialorder %v159_v10, 8.507059e+37 }
 0x2fc   :  { %v244_v4 = vpop.eup %243 }
 0x2fd   :  { %v151_v5 = vmul.f32 %v244_v4, %v149_v3  ;;  %v203_v6 = vpop.xlane.xlu0 %202  ;;  %vm156_vm9 = vweird.f32 %v244_v4 }
 0x2fe   :  { %245 = vrcp.f32 %v203_v6  ;;  %vm157_vm11 = vmor %vm155_vm10, %vm156_vm9  ;;  %v215_v19 = vand.u32 2147483648, %v203_v6  ;;  %v213_v22 = vand.u32 2147483647, %v203_v6  ;;  %vm209_vm14 = vweird.f32 %v203_v6 }
 0x2ff   :  { %v152_v7 = vsub.f32 1.0, %v151_v5 }
 0x300   :  { %v216_v25 = vor.u32 1.1754944e-38, %v215_v19  ;;  %vm214_vm0 = vcmp.eq.f32.partialorder %v213_v22, 8.507059e+37 }
 0x301   :  { %v153_v8 = vmul.f32 %v244_v4, %v152_v7 }
 0x303   :  { %v154_v11 = vadd.f32 %v244_v4, %v153_v8 }
 0x304   :  { %v246_v12 = vpop.eup %245 }
 0x305   :  { %v205_v14 = vmul.f32 %v246_v12, %v203_v6  ;;  %v126_v15 = vpop.xlane.xlu0 %125  ;;  %v158_v16 = vsel %vm157_vm11, %v244_v4, %v154_v11  ;;  %vm210_vm13 = vweird.f32 %v246_v12 }
 0x306   :  { %247 = vrcp.f32 %v126_v15  ;;  %v163_v18 = vsel %vm160_vm12, %v162_v13, %v158_v16  ;;  %vm211_vm15 = vmor %vm209_vm14, %vm210_vm13  ;;  %v138_v31 = vand.u32 2147483648, %v126_v15  ;;  %v136_v33 = vand.u32 2147483647, %v126_v15 }
 0x307   :  { %v206_v17 = vsub.f32 1.0, %v205_v14  ;;  %v164_v20 = vmul.f32 %v340_v47, %v163_v18  ;;  %vm132_vm2 = vweird.f32 %v126_v15 }
 0x308   :  { %v139_v35 = vor.u32 1.1754944e-38, %v138_v31  ;;  %vm137_vm5 = vcmp.eq.f32.partialorder %v136_v33, 8.507059e+37 }
 0x309   :  { %v207_v21 = vmul.f32 %v246_v12, %v206_v17  ;;  %166 = vrot.lane.b32.xlu1 %v164_v20, %s250_s25 }
 0x30b   :  { %v208_v23 = vadd.f32 %v246_v12, %v207_v21 }
 0x30c   :  { %v248_v24 = vpop.eup %247 }
 0x30d   :  { %v128_v26 = vmul.f32 %v248_v24, %v126_v15  ;;  %v212_v27 = vsel %vm211_vm15, %v246_v12, %v208_v23  ;;  %vm133_vm1 = vweird.f32 %v248_v24 }
 0x30e   :  { %v217_v28 = vsel %vm214_vm0, %v216_v25, %v212_v27  ;;  %vm134_vm3 = vmor %vm132_vm2, %vm133_vm1 }
 0x30f   :  { %v129_v29 = vsub.f32 1.0, %v128_v26  ;;  %v218_v30 = vmul.f32 %v340_v47, %v217_v28 }
 0x311   :  { %v130_v32 = vmul.f32 %v248_v24, %v129_v29  ;;  %220 = vrot.lane.b32.xlu1 %v218_v30, %s251_s2 }
 0x313   :  { %v131_v34 = vadd.f32 %v248_v24, %v130_v32 }
 0x315   :  { %v135_v36 = vsel %vm134_vm3, %v248_v24, %v131_v34 }
 0x316   :  { %v140_v37 = vsel %vm137_vm5, %v139_v35, %v135_v36 }
 0x317   :  { %v141_v38 = vmul.f32 %v340_v47, %v140_v37 }
 0x319   :  { %142 = vst.msk [vmem:[%s379_s3] sm:$0x3] %vm123_vm4, %v141_v38 }
 0x363   :  { %v194_v39 = vpop.permute.xlu0 %193 }
 0x364   :  { %232 = vst.msk [vmem:[%s379_s3 + $0x4] sm:$0x3] %vm123_vm4, %v194_v39 }
 0x37b   :  { %v167_v40 = vpop.permute.xlu1 %166 }
 0x37c   :  { %231 = vst.msk [vmem:[%s379_s3 + $0x2] sm:$0x3] %vm123_vm4, %v167_v40 }
 0x383   :  { %v221_v41 = vpop.permute.xlu1 %220 }
 0x384   :  { %233 = vst.msk [vmem:[%s379_s3 + $0x6] sm:$0x3] %vm123_vm4, %v221_v41 }

</bundles_post_ra>
